<compile_context>
chip_gen: v7x
topology: tpu7x:2x2x1
jax: 0.10.0
libtpu: 0.0.40
codegen_flags: <defaults>
</compile_context>

<pallas_src>
import functools

import jax
import jax.numpy as jnp
from jax.experimental import pallas as pl
from jax.experimental.pallas import tpu as pltpu


_BLOCK_BYTE_BUDGET = 1 << 20   # ~1 MiB per block (in and out each)
_MAX_UNROLL = 128              # cap on the VMEM-swap path's static unroll


def _sublane_multiple(itemsize):
    # Dense sublane tile: 8 rows for 4-byte, 16 for 2-byte, 32 for 1-byte dtypes.
    return {4: 8, 2: 16, 1: 32}.get(itemsize, 8)


def _choose_hw_block(hw, itemsize, min_rows, budget):
    """Lane-dim block: multiple of 128 dividing hw, sized by a byte budget."""
    if hw % 128 != 0 or hw <= 128:
        return hw                      # must take the full (possibly padded) extent
    best = 128
    b = 128
    while b <= hw:
        if hw % b == 0 and min_rows * b * itemsize <= budget:
            best = b
        b += 128
    return best


def _choose_channel_block(cpg, sub, row_factor, hw_blk, itemsize, budget,
                          max_unroll=None):
    """In-group channel block: multiple of `sub` dividing cpg, byte-budgeted."""
    if cpg % sub != 0 or cpg <= sub:
        return cpg                     # full extent is always a legal block dim
    best = sub
    b = sub
    while b <= cpg:
        ok_bytes = row_factor * b * hw_blk * itemsize <= budget
        ok_unroll = (max_unroll is None) or (b <= max_unroll)
        if cpg % b == 0 and ok_bytes and ok_unroll:
            best = b
        b += sub
    return best


def _vmem_limit(in_plus_out_block_bytes):
    # Double-buffered in+out plus slack; keep well inside v7x's 64 MiB VMEM.
    need = 2 * in_plus_out_block_bytes + (4 << 20)
    return int(min(max(need, 32 << 20), 48 << 20))


def _shuffle_copy_kernel(x_ref, o_ref):
    # Pure-DMA path: both refs are dense (1, cblk, hw_blk) tiles; the whole
    # g <-> C/g permutation lives in the BlockSpec index_maps.
    o_ref[...] = x_ref[...]


def _shuffle_swap_kernel(x_ref, o_ref, *, cblk):
    # x_ref: (1, g, cblk, hw_blk)  -- input channels as (group j, in-group i)
    # o_ref: (1, cblk, g, hw_blk)  -- output channels as (in-group i, group j)
    # Strided accesses on the LOAD side (3 vld slots), dense (g, hw_blk)
    # stores on the scarce vst slot.  Only cblk unrolled statements.
    for i in range(cblk):
        o_ref[0, i, :, :] = x_ref[0, :, i, :]


def shuffle_block(x, groups):
    """Channel shuffle: [N,C,H,W] -> [N,g,C/g,H,W] -> [N,C/g,g,H,W] -> [N,C,H,W]."""
    N, C, H, W = x.shape
    g = int(groups)
    assert C % g == 0, "channels must be divisible by groups"
    cpg = C // g
    hw = H * W
    itemsize = jnp.dtype(x.dtype).itemsize
    sub = _sublane_multiple(itemsize)

    if g == 1 or cpg == 1:
        # Shuffle is the identity permutation.
        return x

    # Pure-DMA path is legal/worthwhile when the hw axis is lane-aligned,
    # cpg supports dense sublane blocks, and each strided output run is >=1KiB.
    use_dma = (hw % 128 == 0) and (cpg % sub == 0) and (hw * itemsize >= 1024)

    if use_dma:
        hw_blk = _choose_hw_block(hw, itemsize, sub, _BLOCK_BYTE_BUDGET)
        cblk = _choose_channel_block(cpg, sub, 1, hw_blk, itemsize,
                                     _BLOCK_BYTE_BUDGET)
        n_cblk = cpg // cblk
        n_hw = hw // hw_blk
        block_bytes = cblk * hw_blk * itemsize

        # Input viewed as (N, C, hw): channel index = j*cpg + i (contiguous per group).
        x3 = x.reshape(N, C, hw)

        out3 = pl.pallas_call(
            _shuffle_copy_kernel,
            out_shape=jax.ShapeDtypeStruct((N, cpg, g * hw), x.dtype),
            grid_spec=pltpu.PrefetchScalarGridSpec(
                num_scalar_prefetch=0,
                grid=(N, g, n_cblk, n_hw),
                in_specs=[pl.BlockSpec(
                    (1, cblk, hw_blk),
                    lambda n, j, cb, hb: (n, j * n_cblk + cb, hb))],
                out_specs=pl.BlockSpec(
                    (1, cblk, hw_blk),
                    lambda n, j, cb, hb: (n, cb, j * n_hw + hb)),
            ),
            compiler_params=pltpu.CompilerParams(
                dimension_semantics=("parallel", "parallel", "parallel", "parallel"),
                vmem_limit_bytes=_vmem_limit(2 * block_bytes),
            ),
        )(x3)
        # (N, cpg, g*hw) -> (N, C, H, W); flattened channel index = i*g + j.
        return out3.reshape(N, C, H, W)

    # Fallback: large contiguous HBM slabs, g<->C/g swap on VMEM-resident data
    # with strided loads / dense stores.
    hw_blk = _choose_hw_block(hw, itemsize, g * sub, _BLOCK_BYTE_BUDGET)
    cblk = _choose_channel_block(cpg, sub, g, hw_blk, itemsize,
                                 _BLOCK_BYTE_BUDGET, max_unroll=_MAX_UNROLL)
    n_cblk = cpg // cblk
    n_hw = hw // hw_blk
    block_bytes = g * cblk * hw_blk * itemsize

    x4 = x.reshape(N, g, cpg, hw)

    out4 = pl.pallas_call(
        functools.partial(_shuffle_swap_kernel, cblk=cblk),
        out_shape=jax.ShapeDtypeStruct((N, cpg, g, hw), x.dtype),
        grid_spec=pltpu.PrefetchScalarGridSpec(
            num_scalar_prefetch=0,
            grid=(N, n_cblk, n_hw),
            in_specs=[pl.BlockSpec(
                (1, g, cblk, hw_blk),
                lambda n, cb, hb: (n, 0, cb, hb))],
            out_specs=pl.BlockSpec(
                (1, cblk, g, hw_blk),
                lambda n, cb, hb: (n, cb, 0, hb)),
        ),
        compiler_params=pltpu.CompilerParams(
            dimension_semantics=("parallel", "parallel", "parallel"),
            vmem_limit_bytes=_vmem_limit(2 * block_bytes),
        ),
    )(x4)
    # (N, cpg, g, hw) -> (N, C, H, W); flattened channel index = i*g + j.
    return out4.reshape(N, C, H, W)


def shuffle_block_ref(x, groups):
    N, C, H, W = x.shape
    g = groups
    return (
        x.reshape(N, g, C // g, H, W)
        .transpose(0, 2, 1, 3, 4)
        .reshape(N, C, H, W)
    )


if __name__ == "__main__":
    key = jax.random.PRNGKey(0)

    # Primary test shape (matches the module's intended small config).
    # cpg=2 < 8 -> exercises the VMEM-swap fallback path.
    N, C, H, W = 2, 4, 16, 16
    groups = 2
    x = jax.random.normal(key, (N, C, H, W), dtype=jnp.float32)

    out = jax.block_until_ready(shuffle_block(x, groups))
    ref = shuffle_block_ref(x, groups)
    assert out.shape == (N, C, H, W)
    assert out.dtype == x.dtype
    assert jnp.array_equal(out, ref), "Pallas channel shuffle mismatch vs reference"

    # Secondary check: cpg=8, hw=256 -> exercises the pure-DMA index_map path.
    x2 = jax.random.normal(jax.random.PRNGKey(1), (2, 32, 16, 16), dtype=jnp.float32)
    out2 = jax.block_until_ready(shuffle_block(x2, 4))
    ref2 = shuffle_block_ref(x2, 4)
    assert jnp.array_equal(out2, ref2), "Pallas channel shuffle mismatch (C=32, g=4)"

    print("KERNEL_OK")
</pallas_src>

<mosaic_0001>
module attributes {stable_mosaic.version = 11 : i64} {
  func.func @_shuffle_swap_kernel(%arg0: i32, %arg1: i32, %arg2: i32, %arg3: memref<1x2x2x256xf32, #tpu.memory_space<vmem>>, %arg4: memref<1x2x2x256xf32, #tpu.memory_space<vmem>>) attributes {dimension_semantics = [#tpu.dimension_semantics<parallel>, #tpu.dimension_semantics<parallel>, #tpu.dimension_semantics<parallel>], iteration_bounds = array<i64: 2, 1, 1>, scalar_prefetch = 0 : i64, scratch_operands = 0 : i64, tpu.core_type = #tpu.core_type<tc>, window_params = [{transform_indices = @transform_0, window_bounds = array<i64: 1, 2, 2, 256>}, {transform_indices = @transform_1, window_bounds = array<i64: 1, 2, 2, 256>}]} {
    %c0 = arith.constant 0 : index
    %c0_0 = arith.constant 0 : index
    %c0_1 = arith.constant 0 : index
    %c0_2 = arith.constant 0 : index
    %0 = vector.load %arg3[%c0, %c0_0, %c0_1, %c0_2] : memref<1x2x2x256xf32, #tpu.memory_space<vmem>>, vector<1x2x1x256xf32>
    %1 = vector.shape_cast %0 : vector<1x2x1x256xf32> to vector<2x256xf32>
    %c0_3 = arith.constant 0 : index
    %c0_4 = arith.constant 0 : index
    %c0_5 = arith.constant 0 : index
    %c0_6 = arith.constant 0 : index
    %2 = vector.load %arg4[%c0_3, %c0_4, %c0_5, %c0_6] : memref<1x2x2x256xf32, #tpu.memory_space<vmem>>, vector<1x1x2x256xf32>
    %3 = vector.shape_cast %2 : vector<1x1x2x256xf32> to vector<2x256xf32>
    %4 = vector.shape_cast %1 : vector<2x256xf32> to vector<1x1x2x256xf32>
    tpu.vector_store %arg4[%c0_3, %c0_4, %c0_5, %c0_6], %4 {strides = array<i32>} : memref<1x2x2x256xf32, #tpu.memory_space<vmem>>, vector<1x1x2x256xf32>,
    %c0_7 = arith.constant 0 : index
    %c0_8 = arith.constant 0 : index
    %c1 = arith.constant 1 : index
    %c0_9 = arith.constant 0 : index
    %5 = vector.load %arg3[%c0_7, %c0_8, %c1, %c0_9] : memref<1x2x2x256xf32, #tpu.memory_space<vmem>>, vector<1x2x1x256xf32>
    %6 = vector.shape_cast %5 : vector<1x2x1x256xf32> to vector<2x256xf32>
    %c0_10 = arith.constant 0 : index
    %c1_11 = arith.constant 1 : index
    %c0_12 = arith.constant 0 : index
    %c0_13 = arith.constant 0 : index
    %7 = vector.load %arg4[%c0_10, %c1_11, %c0_12, %c0_13] : memref<1x2x2x256xf32, #tpu.memory_space<vmem>>, vector<1x1x2x256xf32>
    %8 = vector.shape_cast %7 : vector<1x1x2x256xf32> to vector<2x256xf32>
    %9 = vector.shape_cast %6 : vector<2x256xf32> to vector<1x1x2x256xf32>
    tpu.vector_store %arg4[%c0_10, %c1_11, %c0_12, %c0_13], %9 {strides = array<i32>} : memref<1x2x2x256xf32, #tpu.memory_space<vmem>>, vector<1x1x2x256xf32>,
    return
  }
  func.func @transform_0(%arg0: i32, %arg1: i32, %arg2: i32) -> (i32, i32, i32, i32) {
    %c0_i32 = arith.constant 0 : i32
    %c0_i32_0 = arith.constant 0 : i32
    return %arg0, %c0_i32, %arg1, %arg2 : i32, i32, i32, i32
  }
  func.func @transform_1(%arg0: i32, %arg1: i32, %arg2: i32) -> (i32, i32, i32, i32) {
    %c0_i32 = arith.constant 0 : i32
    %c0_i32_0 = arith.constant 0 : i32
    return %arg0, %arg1, %c0_i32, %arg2 : i32, i32, i32, i32
  }
}

</mosaic_0001>

<bundles_post_ra>
// kernel: tpu_custom_call.1
= control target key start
LH: loop header
LB: loop body
LE: loop exit
PB: predicated region body
PF: predicated region fallthrough
CT: control target
= control target key end

     0   :  { %6 = vsyncpa [#allocation3], 0  ;;  %s708_s0 = inlined_call_operand.hbm [shape: f32[2,2,2,256], index: 0, kind: input, shape index: {}]   ;;  %s709_s1 = inlined_call_operand.hbm [shape: f32[2,2,2,256], index: 1, kind: output, shape index: {}]  }
   0x1   :  { %8 = vsyncpa [#allocation3 + $0x1], 0 }
   0x2   :  { %9 = vsyncpa [#allocation4], 0 }
   0x3   :  { %11 = vsyncpa [#allocation4 + $0x1], 0  ;;  %s533_s6 = smov 0   ;;  %s535_s7 = smov 0  }
   0x4   :  { %s537_s8 = smov 0   ;;  %s539_s9 = smov 0  }
   0x5   :  { %s541_s10 = smov 0   ;;  %s543_s11 = smov 0  }
   0x6 LB: > { %s314_s12 = sadd.s32 4294967295, %s515_s11   ;;  %s315_s13 = sadd.s32 4294967294, %s515_s11   ;;  %s515_s11 = sphi %s543_s11, %s17_s11   ;;  %s511_s10 = sphi %s541_s10, %s724_s10   ;;  %s507_s9 = sphi %s539_s9, %s723_s9   ;;  %s503_s8 = sphi %s537_s8, %s722_s8   ;;  %s499_s7 = sphi %s535_s7, %s721_s7   ;;  %s495_s6 = sphi %s533_s6, %s720_s6  }
   0x7   : > { %s36_s14 = sadd.s32 1, %s511_s10  ;;  %s47_s15 = sadd.s32 1, %s503_s8 }
   0x8   : > { %p38_p0 = scmp.ge.s32.totalorder %s36_s14, 2  ;;  %p54_p1 = scmp.ne.s32.totalorder %s503_s8, %s499_s7 }
   0x9   : > { %p55_p2 = scmp.eq.s32.totalorder %s515_s11, 0  ;;  %p60_p3 = scmp.ne.s32.totalorder %s499_s7, %s495_s6 }
   0xa   : > { %s726_s14 = smov (%p38_p0, %s36_s14), 0  ;;  %p61_p5 = scmp.eq.s32.totalorder %s314_s12, 0 }
   0xb   : > { %p574_p4 = por %p55_p2, %p54_p1  ;;  %s40_s17 = ssub.s32 %s511_s10, %s726_s14 }
   0xc   : > { %p88_p6 = scmp.eq.s32.totalorder %s314_s12, 1  ;;  %p45_p7 = scmp.eq.s32.totalorder %s40_s17, 0 }
   0xd   : > { %p580_p8 = por %p61_p5, %p60_p3  ;;  %p94_p10 = scmp.eq.s32.totalorder %s315_s13, 1 }
   0xe   : > { %p584_p9 = por %p88_p6, %p54_p1  ;;  %p349_p13 = scmp.lt.s32.totalorder %s515_s11, 2 }
   0xf   : > { %s589_s20 = scalar_select %p45_p7, %s503_s8, %s47_s15  }
  0x10   : > { %s713_s19 = scalar_select %p584_p9, 1, 0 }
  0x11   : > { %p591_p11 = por %p94_p10, %p60_p3  ;;  %s114_s22 = sand.u32 1, %s503_s8  }
  0x12   : > { %s318_s23 = sshll.u32 %s114_s22, 3  ;;  %s334_s24 = sshll.u32 %s511_s10, 7 }
  0x13   : > { %s714_s21 = scalar_select %p591_p11, 1, 0 }
  0x14   : > { %s602_s27 = scalar_lea.hbm %s708_s0, %s334_s24  ;;  %s118_s28 = scalar_lea.vmem [#allocation2], %s318_s23 }
  0x15   : > { %s129_s29 = sshll.u32 %s118_s28, 4  ;;  %p608_p0 = pnand %p349_p13, %p574_p4  ;;  %s604_s29 = int_to_ptr.vmem [resolvable:$true] %s129_s29 }
  0x16   : > { %s613_s2 = scalar_lea.sflag [#allocation3], %s114_s22  ;;  %s403_s3 = scalar_lea.hbm %s602_s27, 128 }
  0x17   : > { %p404_p2 = scmp.ne.s32.totalorder %s602_s27, %s403_s3  ;;  %p405_p3 = pneg %p608_p0 }
  0x18   : > { %s408_s12 = scalar_lea.hbm %s708_s0, 256  ;;  %p409_p4 = scmp.lt.u32.totalorder %s602_s27, %s708_s0 }
  0x19   : > { %p406_p5 = pnand %p405_p3, %p404_p2  ;;  %p410_p7 = scmp.lt.u32.totalorder %s408_s12, %s403_s3 }
  0x1a   : > { %p412_p13 = scmp.lt.u32.totalorder %s403_s3, %s602_s27 }
  0x1b   : > { %p407_p6 = pneg %p406_p5  ;;  %p411_p10 = por %p410_p7, %p409_p4 }
  0x1d   : > { %p413_p12 = por %p412_p13, %p411_p10 }
  0x1f   : > { %p414_p1 = pnand %p413_p12, %p407_p6 }
  0x21   : > { %417 = shalt.err (!%p414_p1)
}
  0x22   : > { %s418_s16 = scalar_lea.vmem %s604_s29, 128  ;;  %s517_s17 = smov [#allocation2]  }
  0x23   : > { %p419_p2 = scmp.ne.s32.totalorder %s604_s29, %s418_s16  ;;  %s423_s22 = sshll.u32 %s517_s17, 4  ;;  %s424_s22 = int_to_ptr.vmem [resolvable:$false] %s423_s22 }
  0x24   : > { %s425_s23 = scalar_lea.vmem %s424_s22, 256  ;;  %p426_p9 = scmp.lt.s32.totalorder %s604_s29, %s424_s22 }
  0x25   : > { %p421_p5 = pnand %p419_p2, %p405_p3  ;;  %p427_p4 = scmp.lt.s32.totalorder %s425_s23, %s418_s16 }
  0x27   : > { %p422_p11 = pneg %p421_p5  ;;  %p428_p7 = por %p427_p4, %p426_p9 }
  0x29   : > { %p429_p10 = pnand %p428_p7, %p422_p11 }
  0x2b   : > { %432 = shalt.err (!%p429_p10)
}
  0x2c   : > { %s518_s24 = smov 64   ;;  %s519_s25 = smov 4  }
  0x2d   : > { %344 = dma.hbm_to_vmem [thread:$0]  (!%p608_p0), %s602_s27, 128, %s604_s29, %s613_s2, %s518_s24, %s518_s24, %s519_s25  }
  0x2e   : > { %p137_p12 = scmp.lt.s32.totalorder %s515_s11, 3  ;;  %p716_p1 = scmp.ge.s32.totalorder %s515_s11, 1 }
  0x30   : > { %p138_p3 = pnand %p716_p1, %p137_p12 }
  0x31   : > { %s645_s26 = sand.u32 (!%p138_p3), 1, %s499_s7  }
  0x32   : > { %141 = sbr.rel (%p138_p3) target bundleno = 86 (0x56), region = 24  ;;  %s322_s28 = sshll.u32 (!%p138_p3), %s645_s26, 3 }
  0x33   : > { %s144_s3 = scalar_lea.sflag (!%p138_p3), [#allocation3], %s645_s26  ;;  %s147_s4 = scalar_lea.vmem (!%p138_p3), [#allocation2], %s322_s28 }
  0x39   : > { %486 = dma.done.wait (%p580_p8), %s144_s3, 128  }
  0x3a   : > { %488 = vsyncadd (%p580_p8), %s144_s3, 4294967168  ;;  %s165_s27 = scalar_lea.vmem [#allocation5], %s322_s28  ;;  %s336_s30 = sshll.u32 %s507_s9, 7  ;;  %v169_v0 = vld [vmem:[%s147_s4] ss:$2 sm:$0x3] }
  0x3b   : > { %s220_s29 = sshll.u32 %s165_s27, 4  ;;  %v324_v1 = vld [vmem:[%s147_s4 + $0x4] ss:$2 sm:$0x3]  ;;  %s659_s18 = scalar_lea.hbm %s709_s1, %s336_s30  ;;  %s654_s29 = int_to_ptr.vmem [resolvable:$true] %s220_s29 }
  0x3c   : > { %v174_v2 = vcombine.low %v169_v0, %v324_v1  ;;  %v326_v3 = vld [vmem:[%s147_s4 + $0x1] ss:$2 sm:$0x3]  ;;  %v327_v4 = vld [vmem:[%s147_s4 + $0x5] ss:$2 sm:$0x3] }
  0x3d   : > { %v190_v5 = vcombine.low %v326_v3, %v327_v4  ;;  %s202_s12 = scalar_lea.sflag [#allocation4], %s645_s26  ;;  %s433_s9 = scalar_lea.vmem %s654_s29, 128 }
  0x3e   : > { %325 = vst.sshfl [vmem:[%s165_s27] sm:$0x33 pattern:$0x75316420] %v174_v2  ;;  %p434_p8 = scmp.ne.s32.totalorder %s654_s29, %s433_s9  ;;  %p717_p9 = scmp.ne.s32.totalorder %s713_s19, 0 }
  0x3f   : > { %335 = vst.sshfl [vmem:[%s165_s27 + $0x4] sm:$0x33 pattern:$0x75316420] %v190_v5  ;;  %s520_s13 = smov [#allocation5]  }
  0x40   : > { %p435_p11 = pnand %p434_p8, %p717_p9  ;;  %s437_s15 = sshll.u32 %s520_s13, 4  ;;  %s438_s15 = int_to_ptr.vmem [resolvable:$false] %s437_s15 }
  0x41   : > { %s439_s16 = scalar_lea.vmem %s438_s15, 256  ;;  %p440_p6 = scmp.lt.s32.totalorder %s654_s29, %s438_s15 }
  0x42   : > { %p436_p0 = pneg %p435_p11  ;;  %p441_p13 = scmp.lt.s32.totalorder %s439_s16, %s433_s9 }
  0x44   : > { %p442_p2 = por %p441_p13, %p440_p6 }
  0x46   : > { %p443_p5 = pnand %p442_p2, %p436_p0 }
  0x48   : > { %446 = shalt.err (!%p443_p5)
}
  0x49   : > { %s447_s17 = scalar_lea.hbm %s659_s18, 128  ;;  %s451_s24 = scalar_lea.hbm %s709_s1, 256 }
  0x4a   : > { %p448_p4 = scmp.ne.s32.totalorder %s659_s18, %s447_s17  ;;  %p452_p12 = scmp.lt.u32.totalorder %s659_s18, %s709_s1 }
  0x4b   : > { %p453_p1 = scmp.lt.u32.totalorder %s451_s24, %s447_s17  ;;  %p455_p8 = scmp.lt.u32.totalorder %s447_s17, %s659_s18 }
  0x4c   : > { %p449_p7 = pnand %p448_p4, %p717_p9 }
  0x4d   : > { %p454_p3 = por %p453_p1, %p452_p12 }
  0x4e   : > { %p450_p10 = pneg %p449_p7 }
  0x4f   : > { %p456_p11 = por %p455_p8, %p454_p3 }
  0x51   : > { %p457_p0 = pnand %p456_p11, %p450_p10 }
  0x53   : > { %460 = shalt.err (!%p457_p0)
}
  0x54   : > { %s521_s3 = smov 64   ;;  %s522_s4 = smov 4  }
  0x55   : > { %339 = dma.vmem_to_hbm [thread:$0]  (%p717_p9), %s654_s29, 128, %s659_s18, %s202_s12, %s521_s3, %s521_s3, %s522_s4  }
  0x56 PF: > { %s235_s27 = sand.u32 1, %s495_s6   ;;  %p718_p6 = scmp.ne.s32.totalorder %s714_s21, 0 }
  0x57   : > { %p719_p13 = scmp.ge.s32.totalorder %s515_s11, 2  ;;  %s236_s30 = scalar_lea.sflag [#allocation4], %s235_s27 }
  0x59   : > { %p346_p2 = pnand %p719_p13, %p718_p6 }
  0x5b   : > { %490 = dma.done.wait (!%p346_p2), %s236_s30, 128  }
  0x5c   : > { %492 = vsyncadd (!%p346_p2), %s236_s30, 4294967168  ;;  %s17_s11 = sadd.s32 1, %s515_s11   ;;  %s720_s6 = smov %s499_s7 }
  0x5d   : > { %p14_p5 = scmp.ge.s32.totalorder %s17_s11, 4   ;;  %s721_s7 = smov %s503_s8 }
  0x5e   : > { %s722_s8 = smov %s589_s20  ;;  %s723_s9 = smov %s511_s10 }
  0x5f   : > { %s724_s10 = smov %s726_s14  ;;  %16 = sbr.rel (!%p14_p5) target bundleno = 6 (0x6), region = 73 }
  0x66   :  { %241 = vsyncpa [#allocation3], 1 }
  0x67   :  { %243 = vsyncpa [#allocation3 + $0x1], 1 }
  0x68   :  { %244 = vsyncpa [#allocation4], 1 }
  0x69   :  { %246 = vsyncpa [#allocation4 + $0x1], 1 }

</bundles_post_ra>
